<compile_context>
chip_gen: v7x
topology: tpu7x:2x2x1
jax: 0.10.0
libtpu: 0.0.40
codegen_flags: <defaults>
</compile_context>

<pallas_src>
import jax
import jax.numpy as jnp
from jax.experimental import pallas as pl
from jax.experimental.pallas import tpu as pltpu

BN_EPS = 1e-5


# ---------------------------------------------------------------------------
# Kernel
# ---------------------------------------------------------------------------
def _attention_block_kernel(g_ref, x_ref, wg_ref, wx_ref, bgx_ref, wp_ref, bp_ref,
                            o_ref):
    # g_ref : (1, F_g, T) bf16     x_ref : (1, F_l, T) bf16    o_ref : (1, F_l, T) bf16
    # wg_ref: (F_int, F_g) bf16    wx_ref: (F_int, F_l) bf16
    # bgx_ref: (F_int, 1) f32  (combined folded-BN biases of the two branches)
    # wp_ref : (F_int, 1) f32      bp_ref: (1, 1) f32
    g = g_ref[0]                                                     # (F_g, T)
    x = x_ref[0]                                                     # (F_l, T)

    # Both 1x1 conv branches (BN folded on host), f32 accumulation on the MXU.
    a = jnp.dot(wg_ref[...], g, preferred_element_type=jnp.float32)
    a = a + jnp.dot(wx_ref[...], x, preferred_element_type=jnp.float32)
    a = jnp.maximum(a + bgx_ref[...], 0.0)                           # (F_int, T) f32

    # psi branch: M=1 output channel -> do it on the VPU (broadcast multiply) +
    # sublane reduce (XLU) so it never touches the MXU critical path.
    psi = jnp.sum(a * wp_ref[...], axis=0, keepdims=True) + bp_ref[...]   # (1, T)
    psi = jax.nn.sigmoid(psi)

    # Gate the skip connection.
    o_ref[...] = (x.astype(jnp.float32) * psi)[None].astype(o_ref.dtype)


# ---------------------------------------------------------------------------
# Host-side helpers
# ---------------------------------------------------------------------------
def _fold_bn_into_conv(w, b, gamma, beta, mean, var):
    """Fold eval-mode BatchNorm2d into the preceding 1x1 conv (bias=True)."""
    c_out, c_in = w.shape[0], w.shape[1]
    scale = gamma * jax.lax.rsqrt(var + BN_EPS)                      # (C_out,)
    w_eff = w.reshape(c_out, c_in) * scale[:, None]                  # (C_out, C_in)
    b_eff = scale * (b - mean) + beta                                # (C_out,)
    return w_eff.astype(jnp.float32), b_eff.astype(jnp.float32)


def _vmem_capacity_bytes():
    """Physical VMEM of the current chip; conservative 64 MiB fallback (v7x floor)."""
    try:
        cap = getattr(pltpu.get_tpu_info(), "vmem_capacity_bytes", None)
        if cap:
            return int(cap)
    except Exception:
        pass
    return 64 * 1024 * 1024


def _pick_hw_tile(hw, f_g, f_l, f_int, n_batch):
    """Largest 128-multiple lane tile that fits a generation-aware VMEM budget,
    accounting for double-buffered bf16 activations, resident weights and the
    f32 (F_int, T) intermediates; keeps padding waste modest and >= 2 grid steps."""
    cap = _vmem_capacity_bytes()
    budget = (3 * cap) // 8                       # ~48 MiB v5e/v6e, ~24 MiB v7x
    # T-independent resident bytes: double-buffered bf16 weights + f32 biases.
    fixed = 2 * ((f_int * (f_g + f_l)) * 2 + 2 * f_int * 4 + 4)
    budget = max(budget - fixed, 1 << 20)
    # Per-HW-column bytes: bf16 g/x inputs + bf16 out (double-buffered) plus
    # ~4 live f32 (F_int, T) intermediates (branch accums, relu, psi product).
    per_col = 2 * (f_g + 2 * f_l) * 2 + 4 * f_int * 4

    hw128 = ((hw + 127) // 128) * 128
    tile = 128
    for t in (32768, 16384, 8192, 4096, 2048, 1024, 512, 256, 128):
        if t > hw128:
            continue
        if per_col * t > budget:
            continue
        waste = pl.cdiv(hw, t) * t - hw
        if waste * 4 > hw:                        # avoid >25% padding waste
            continue
        tile = t
        break
    # v7x has 2 TensorCores: keep at least 2 grid steps so neither sits idle.
    while n_batch * pl.cdiv(hw, tile) < 2 and tile > 128:
        tile //= 2
    return tile


def attention_block_forward(g, x, params, compute_dtype=jnp.bfloat16):
    """g: (N, F_g, H, W), x: (N, F_l, H, W)  ->  (N, F_l, H, W) in `compute_dtype`.

    params: dict with conv weights/biases and BN running stats for the three
            branches (W_g, W_x, psi), PyTorch layouts. BN is eval-mode (running stats).
    """
    N, F_g, H, W = g.shape
    _, F_l, _, _ = x.shape
    HW = H * W

    # Fold BN into the 1x1 convs (one-time host-side prep) and combine the two
    # branch biases into a single additive term.
    wg_eff, bg_eff = _fold_bn_into_conv(params["wg"], params["bg"],
                                        params["gamma_g"], params["beta_g"],
                                        params["mean_g"], params["var_g"])
    wx_eff, bx_eff = _fold_bn_into_conv(params["wx"], params["bx"],
                                        params["gamma_x"], params["beta_x"],
                                        params["mean_x"], params["var_x"])
    wp_eff, bp_eff = _fold_bn_into_conv(params["wp"], params["bp"],
                                        params["gamma_p"], params["beta_p"],
                                        params["mean_p"], params["var_p"])
    F_int = wg_eff.shape[0]

    wg_eff = wg_eff.astype(compute_dtype)                       # (F_int, F_g)
    wx_eff = wx_eff.astype(compute_dtype)                       # (F_int, F_l)
    b_comb = (bg_eff + bx_eff).reshape(F_int, 1)                # (F_int, 1) f32
    wp_col = wp_eff.reshape(F_int, 1).astype(jnp.float32)       # (F_int, 1) f32
    bp_eff = bp_eff.reshape(1, 1)                               # (1, 1) f32

    g_flat = g.reshape(N, F_g, HW).astype(compute_dtype)
    x_flat = x.reshape(N, F_l, HW).astype(compute_dtype)

    tile = _pick_hw_tile(HW, F_g, F_l, F_int, N)
    n_hw_tiles = pl.cdiv(HW, tile)
    HW_pad = n_hw_tiles * tile
    if HW_pad != HW:
        pad = ((0, 0), (0, 0), (0, HW_pad - HW))
        g_flat = jnp.pad(g_flat, pad)
        x_flat = jnp.pad(x_flat, pad)
    grid = (N, n_hw_tiles)

    in_specs = [
        pl.BlockSpec((1, F_g, tile), lambda n, t: (n, 0, t)),   # g tile
        pl.BlockSpec((1, F_l, tile), lambda n, t: (n, 0, t)),   # x tile
        pl.BlockSpec((F_int, F_g),   lambda n, t: (0, 0)),      # wg_eff (resident)
        pl.BlockSpec((F_int, F_l),   lambda n, t: (0, 0)),      # wx_eff (resident)
        pl.BlockSpec((F_int, 1),     lambda n, t: (0, 0)),      # combined branch bias
        pl.BlockSpec((F_int, 1),     lambda n, t: (0, 0)),      # wp_eff (column)
        pl.BlockSpec((1, 1),         lambda n, t: (0, 0)),      # bp_eff
    ]
    out_specs = pl.BlockSpec((1, F_l, tile), lambda n, t: (n, 0, t))

    vmem_limit = min((3 * _vmem_capacity_bytes()) // 4, 100 * 1024 * 1024)

    out_flat = pl.pallas_call(
        _attention_block_kernel,
        out_shape=jax.ShapeDtypeStruct((N, F_l, HW_pad), compute_dtype),
        grid=grid,
        in_specs=in_specs,
        out_specs=out_specs,
        compiler_params=pltpu.CompilerParams(
            dimension_semantics=("parallel", "parallel"),
            vmem_limit_bytes=int(vmem_limit),
        ),
    )(g_flat, x_flat, wg_eff, wx_eff, b_comb, wp_col, bp_eff)

    if HW_pad != HW:
        out_flat = out_flat[:, :, :HW]
    return out_flat.reshape(N, F_l, H, W)


# ---------------------------------------------------------------------------
# Pure-JAX reference (mirrors the PyTorch module, BN in eval mode, f32)
# ---------------------------------------------------------------------------
def _reference_forward(g, x, p):
    def conv_bn(inp, w, b, gamma, beta, mean, var):
        c_out, c_in = w.shape[0], w.shape[1]
        y = jnp.einsum("oc,nchw->nohw", w.reshape(c_out, c_in), inp)
        y = y + b.reshape(1, c_out, 1, 1)
        inv = jax.lax.rsqrt(var + BN_EPS)
        return ((y - mean.reshape(1, c_out, 1, 1))
                * (gamma * inv).reshape(1, c_out, 1, 1)
                + beta.reshape(1, c_out, 1, 1))

    g1 = conv_bn(g, p["wg"], p["bg"], p["gamma_g"], p["beta_g"], p["mean_g"], p["var_g"])
    x1 = conv_bn(x, p["wx"], p["bx"], p["gamma_x"], p["beta_x"], p["mean_x"], p["var_x"])
    a = jnp.maximum(g1 + x1, 0.0)
    psi = conv_bn(a, p["wp"], p["bp"], p["gamma_p"], p["beta_p"], p["mean_p"], p["var_p"])
    psi = jax.nn.sigmoid(psi)
    return x * psi


# ---------------------------------------------------------------------------
# Demo / self-test
# ---------------------------------------------------------------------------
if __name__ == "__main__":
    # Small shapes consistent with the module: batch=2, F_g=F_l=4, F_int=8, 16x16.
    N, F_g, F_l, F_int, H, W = 2, 4, 4, 8, 16, 16

    key = jax.random.PRNGKey(0)
    keys = jax.random.split(key, 20)

    g = jax.random.normal(keys[0], (N, F_g, H, W), dtype=jnp.float32)
    x = jax.random.normal(keys[1], (N, F_l, H, W), dtype=jnp.float32)

    def bn_params(k0, k1, k2, k3, c):
        return (1.0 + 0.1 * jax.random.normal(k0, (c,), dtype=jnp.float32),   # gamma
                0.1 * jax.random.normal(k1, (c,), dtype=jnp.float32),         # beta
                0.1 * jax.random.normal(k2, (c,), dtype=jnp.float32),         # running_mean
                jnp.abs(1.0 + 0.1 * jax.random.normal(k3, (c,), dtype=jnp.float32)))  # running_var

    gamma_g, beta_g, mean_g, var_g = bn_params(keys[4], keys[5], keys[6], keys[7], F_int)
    gamma_x, beta_x, mean_x, var_x = bn_params(keys[8], keys[9], keys[10], keys[11], F_int)
    gamma_p, beta_p, mean_p, var_p = bn_params(keys[12], keys[13], keys[14], keys[15], 1)

    params = dict(
        wg=0.1 * jax.random.normal(keys[2], (F_int, F_g, 1, 1), dtype=jnp.float32),
        bg=0.1 * jax.random.normal(keys[16], (F_int,), dtype=jnp.float32),
        gamma_g=gamma_g, beta_g=beta_g, mean_g=mean_g, var_g=var_g,
        wx=0.1 * jax.random.normal(keys[3], (F_int, F_l, 1, 1), dtype=jnp.float32),
        bx=0.1 * jax.random.normal(keys[17], (F_int,), dtype=jnp.float32),
        gamma_x=gamma_x, beta_x=beta_x, mean_x=mean_x, var_x=var_x,
        wp=0.1 * jax.random.normal(keys[18], (1, F_int, 1, 1), dtype=jnp.float32),
        bp=0.1 * jax.random.normal(keys[19], (1,), dtype=jnp.float32),
        gamma_p=gamma_p, beta_p=beta_p, mean_p=mean_p, var_p=var_p,
    )

    out = attention_block_forward(g, x, params)          # bf16 activations
    out = jax.block_until_ready(out)

    ref = _reference_forward(g, x, params)                # f32 reference
    assert out.shape == (N, F_l, H, W)
    # bf16 activations/weights -> loosened tolerance vs the f32 reference.
    assert jnp.allclose(out.astype(jnp.float32), ref, atol=2e-2, rtol=2e-2), \
        "mismatch vs reference"

    print("KERNEL_OK")
</pallas_src>

<mosaic_0001>
module attributes {stable_mosaic.version = 11 : i64} {
  func.func @_attention_block_kernel(%arg0: i32, %arg1: i32, %arg2: memref<1x4x256xbf16, #tpu.memory_space<vmem>>, %arg3: memref<1x4x256xbf16, #tpu.memory_space<vmem>>, %arg4: memref<8x4xbf16, #tpu.memory_space<vmem>>, %arg5: memref<8x4xbf16, #tpu.memory_space<vmem>>, %arg6: memref<8x1xf32, #tpu.memory_space<vmem>>, %arg7: memref<8x1xf32, #tpu.memory_space<vmem>>, %arg8: memref<1x1xf32, #tpu.memory_space<vmem>>, %arg9: memref<1x4x256xbf16, #tpu.memory_space<vmem>>) attributes {dimension_semantics = [#tpu.dimension_semantics<parallel>, #tpu.dimension_semantics<parallel>], iteration_bounds = array<i64: 2, 1>, scalar_prefetch = 0 : i64, scratch_operands = 0 : i64, tpu.core_type = #tpu.core_type<tc>, window_params = [{transform_indices = @transform_0, window_bounds = array<i64: 1, 4, 256>}, {transform_indices = @transform_1, window_bounds = array<i64: 1, 4, 256>}, {pipeline_mode = #tpu.pipeline_mode<synchronous>, transform_indices = @transform_2, window_bounds = array<i64: 8, 4>}, {pipeline_mode = #tpu.pipeline_mode<synchronous>, transform_indices = @transform_3, window_bounds = array<i64: 8, 4>}, {pipeline_mode = #tpu.pipeline_mode<synchronous>, transform_indices = @transform_4, window_bounds = array<i64: 8, 1>}, {pipeline_mode = #tpu.pipeline_mode<synchronous>, transform_indices = @transform_5, window_bounds = array<i64: 8, 1>}, {pipeline_mode = #tpu.pipeline_mode<synchronous>, transform_indices = @transform_6, window_bounds = array<i64: 1, 1>}, {transform_indices = @transform_7, window_bounds = array<i64: 1, 4, 256>}]} {
    %c0 = arith.constant 0 : index
    %c0_0 = arith.constant 0 : index
    %c0_1 = arith.constant 0 : index
    %0 = vector.load %arg2[%c0, %c0_0, %c0_1] : memref<1x4x256xbf16, #tpu.memory_space<vmem>>, vector<1x4x256xbf16>
    %1 = vector.shape_cast %0 : vector<1x4x256xbf16> to vector<4x256xbf16>
    %c0_2 = arith.constant 0 : index
    %c0_3 = arith.constant 0 : index
    %c0_4 = arith.constant 0 : index
    %2 = vector.load %arg3[%c0_2, %c0_3, %c0_4] : memref<1x4x256xbf16, #tpu.memory_space<vmem>>, vector<1x4x256xbf16>
    %3 = vector.shape_cast %2 : vector<1x4x256xbf16> to vector<4x256xbf16>
    %c0_5 = arith.constant 0 : index
    %c0_6 = arith.constant 0 : index
    %4 = vector.load %arg4[%c0_5, %c0_6] : memref<8x4xbf16, #tpu.memory_space<vmem>>, vector<8x4xbf16>
    %cst = arith.constant dense<0.000000e+00> : vector<8x256xf32>
    %5 = tpu.matmul %4, %1, %cst {dimension_numbers = #tpu.dot_dimension_numbers<[1], [0], [0], [1], [0, 0, 1, 1], [], []>} : vector<8x4xbf16>, vector<4x256xbf16>, vector<8x256xf32> -> vector<8x256xf32>
    %c0_7 = arith.constant 0 : index
    %c0_8 = arith.constant 0 : index
    %6 = vector.load %arg5[%c0_7, %c0_8] : memref<8x4xbf16, #tpu.memory_space<vmem>>, vector<8x4xbf16>
    %cst_9 = arith.constant dense<0.000000e+00> : vector<8x256xf32>
    %7 = tpu.matmul %6, %3, %cst_9 {dimension_numbers = #tpu.dot_dimension_numbers<[1], [0], [0], [1], [0, 0, 1, 1], [], []>} : vector<8x4xbf16>, vector<4x256xbf16>, vector<8x256xf32> -> vector<8x256xf32>
    %8 = arith.addf %5, %7 : vector<8x256xf32>
    %c0_10 = arith.constant 0 : index
    %c0_11 = arith.constant 0 : index
    %9 = vector.load %arg6[%c0_10, %c0_11] : memref<8x1xf32, #tpu.memory_space<vmem>>, vector<8x1xf32>
    %10 = vector.broadcast %9 : vector<8x1xf32> to vector<8x256xf32>
    %11 = arith.addf %8, %10 : vector<8x256xf32>
    %cst_12 = arith.constant 0.000000e+00 : f32
    %12 = vector.broadcast %cst_12 : f32 to vector<8x256xf32>
    %13 = arith.maximumf %11, %12 : vector<8x256xf32>
    %c0_13 = arith.constant 0 : index
    %c0_14 = arith.constant 0 : index
    %14 = vector.load %arg7[%c0_13, %c0_14] : memref<8x1xf32, #tpu.memory_space<vmem>>, vector<8x1xf32>
    %15 = vector.broadcast %14 : vector<8x1xf32> to vector<8x256xf32>
    %16 = arith.mulf %13, %15 : vector<8x256xf32>
    %cst_15 = arith.constant dense<0.000000e+00> : vector<256xf32>
    %17 = vector.multi_reduction <add>, %16, %cst_15 [0] : vector<8x256xf32> to vector<256xf32>
    %18 = vector.shape_cast %17 : vector<256xf32> to vector<1x256xf32>
    %c0_16 = arith.constant 0 : index
    %c0_17 = arith.constant 0 : index
    %19 = vector.load %arg8[%c0_16, %c0_17] : memref<1x1xf32, #tpu.memory_space<vmem>>, vector<1x1xf32>
    %20 = vector.broadcast %19 : vector<1x1xf32> to vector<1x256xf32>
    %21 = arith.addf %18, %20 : vector<1x256xf32>
    %22 = arith.negf %21 : vector<1x256xf32>
    %23 = math.exp %22 : vector<1x256xf32>
    %cst_18 = arith.constant 1.000000e+00 : f32
    %24 = vector.broadcast %cst_18 : f32 to vector<1x256xf32>
    %25 = arith.addf %24, %23 : vector<1x256xf32>
    %26 = arith.divf %24, %25 : vector<1x256xf32>
    %27 = arith.extf %3 : vector<4x256xbf16> to vector<4x256xf32>
    %28 = vector.broadcast %26 : vector<1x256xf32> to vector<4x256xf32>
    %29 = arith.mulf %27, %28 : vector<4x256xf32>
    %30 = vector.shape_cast %29 : vector<4x256xf32> to vector<1x4x256xf32>
    %31 = arith.truncf %30 : vector<1x4x256xf32> to vector<1x4x256xbf16>
    %c0_19 = arith.constant 0 : index
    %c0_20 = arith.constant 0 : index
    %c0_21 = arith.constant 0 : index
    %32 = vector.load %arg9[%c0_19, %c0_20, %c0_21] : memref<1x4x256xbf16, #tpu.memory_space<vmem>>, vector<1x4x256xbf16>
    tpu.vector_store %arg9[%c0_19, %c0_20, %c0_21], %31 {strides = array<i32>} : memref<1x4x256xbf16, #tpu.memory_space<vmem>>, vector<1x4x256xbf16>,
    return
  }
  func.func @transform_0(%arg0: i32, %arg1: i32) -> (i32, i32, i32) {
    %c0_i32 = arith.constant 0 : i32
    %c0_i32_0 = arith.constant 0 : i32
    return %arg0, %c0_i32, %arg1 : i32, i32, i32
  }
  func.func @transform_1(%arg0: i32, %arg1: i32) -> (i32, i32, i32) {
    %c0_i32 = arith.constant 0 : i32
    %c0_i32_0 = arith.constant 0 : i32
    return %arg0, %c0_i32, %arg1 : i32, i32, i32
  }
  func.func @transform_2(%arg0: i32, %arg1: i32) -> (i32, i32) {
    %c0_i32 = arith.constant 0 : i32
    %c0_i32_0 = arith.constant 0 : i32
    %c0_i32_1 = arith.constant 0 : i32
    return %c0_i32, %c0_i32_0 : i32, i32
  }
  func.func @transform_3(%arg0: i32, %arg1: i32) -> (i32, i32) {
    %c0_i32 = arith.constant 0 : i32
    %c0_i32_0 = arith.constant 0 : i32
    %c0_i32_1 = arith.constant 0 : i32
    return %c0_i32, %c0_i32_0 : i32, i32
  }
  func.func @transform_4(%arg0: i32, %arg1: i32) -> (i32, i32) {
    %c0_i32 = arith.constant 0 : i32
    %c0_i32_0 = arith.constant 0 : i32
    %c0_i32_1 = arith.constant 0 : i32
    return %c0_i32, %c0_i32_0 : i32, i32
  }
  func.func @transform_5(%arg0: i32, %arg1: i32) -> (i32, i32) {
    %c0_i32 = arith.constant 0 : i32
    %c0_i32_0 = arith.constant 0 : i32
    %c0_i32_1 = arith.constant 0 : i32
    return %c0_i32, %c0_i32_0 : i32, i32
  }
  func.func @transform_6(%arg0: i32, %arg1: i32) -> (i32, i32) {
    %c0_i32 = arith.constant 0 : i32
    %c0_i32_0 = arith.constant 0 : i32
    %c0_i32_1 = arith.constant 0 : i32
    return %c0_i32, %c0_i32_0 : i32, i32
  }
  func.func @transform_7(%arg0: i32, %arg1: i32) -> (i32, i32, i32) {
    %c0_i32 = arith.constant 0 : i32
    %c0_i32_0 = arith.constant 0 : i32
    return %arg0, %c0_i32, %arg1 : i32, i32, i32
  }
}

</mosaic_0001>

<bundles_post_ra>
// kernel: tpu_custom_call.1
= control target key start
LH: loop header
LB: loop body
LE: loop exit
PB: predicated region body
PF: predicated region fallthrough
CT: control target
= control target key end

     0   :  { %s1014_s0 = inlined_call_operand.vmem [shape: bf16[2,4,256], index: 0, kind: input, shape index: {}]   ;;  %s1015_s1 = inlined_call_operand.vmem [shape: bf16[2,4,256], index: 1, kind: input, shape index: {}]   ;;  %s1016_s2 = inlined_call_operand.vmem [shape: bf16[8,4], index: 2, kind: input, shape index: {}]   ;;  %s1017_s3 = inlined_call_operand.vmem [shape: bf16[8,4], index: 3, kind: input, shape index: {}]   ;;  %s1018_s4 = inlined_call_operand.vmem [shape: f32[8,1], index: 4, kind: input, shape index: {}]   ;;  %s1019_s5 = inlined_call_operand.vmem [shape: f32[8,1], index: 5, kind: input, shape index: {}]   ;;  %s1020_s6 = inlined_call_operand.<no memory space> [shape: f32[1,1], index: 6, kind: input, shape index: {}]   ;;  %s1021_s7 = inlined_call_operand.hbm [shape: bf16[2,4,256], index: 7, kind: output, shape index: {}]  }
   0x1   :  { %v12_v0 = vstv %s1020_s6 }
   0x2   :  { %13 = vst [vmem:[#allocation2] sm:$0x1] %v12_v0 }
   0x3   :  { %14 = vsyncpa [#allocation4], 0 }
   0x4   :  { %16 = vsyncpa [#allocation4 + $0x1], 0  ;;  %s879_s26 = smov 0   ;;  %s881_s27 = smov 0  }
   0x5   :  { %s883_s28 = smov 0   ;;  %s885_s29 = smov 0  }
   0x6   :  { %s887_s30 = smov 0   ;;  %s889_s8 = smov 0  }
   0x7 LB: > { %s659_s6 = sadd.s32 4294967295, %s831_s8   ;;  %s660_s9 = sadd.s32 4294967294, %s831_s8   ;;  %s831_s8 = sphi %s889_s8, %s22_s8   ;;  %s827_s30 = sphi %s887_s30, %s1028_s30   ;;  %s823_s29 = sphi %s885_s29, %s1027_s29   ;;  %s819_s28 = sphi %s883_s28, %s1026_s28   ;;  %s815_s27 = sphi %s881_s27, %s1025_s27   ;;  %s811_s26 = sphi %s879_s26, %s1024_s26  }
   0x8   : > { %s34_s10 = sadd.s32 1, %s827_s30  ;;  %s204_s11 = sadd.s32 1, %s819_s28 }
   0x9   : > { %p36_p0 = scmp.ge.s32.totalorder %s34_s10, 2  ;;  %p214_p1 = scmp.ne.s32.totalorder %s819_s28, %s815_s27 }
   0xa   : > { %p215_p2 = scmp.eq.s32.totalorder %s659_s6, 1  ;;  %p220_p3 = scmp.ne.s32.totalorder %s815_s27, %s811_s26 }
   0xb   : > { %s1030_s10 = smov (%p36_p0, %s34_s10), 0  ;;  %p221_p5 = scmp.eq.s32.totalorder %s660_s9, 1 }
   0xc   : > { %p919_p4 = por %p215_p2, %p214_p1  ;;  %s199_s13 = ssub.s32 %s827_s30, %s1030_s10 }
   0xd   : > { %p663_p6 = scmp.ge.s32.totalorder %s831_s8, 1  ;;  %p202_p7 = scmp.eq.s32.totalorder %s199_s13, 0 }
   0xe   : > { %p926_p8 = por %p221_p5, %p220_p3  ;;  %p280_p9 = scmp.lt.s32.totalorder %s831_s8, 3 }
   0xf   : > { %s932_s15 = scalar_select %p202_p7, %s819_s28, %s204_s11  }
  0x10   : > { %p281_p10 = pnand %p663_p6, %p280_p9 }
  0x11   : > { %p326_p11 = scmp.lt.s32.totalorder (!%p281_p10), %s823_s29, 1  ;;  %v355_v1 = vlaneseq (!%p281_p10)  ;;  %v471_v2 = vld [vmem:[%s1018_s4] sm:$0xff] (!%p281_p10)  ;;  %v833_v3 = vmov (!%p281_p10), 1983009808   ;;  %v834_v5 = vmov (!%p281_p10), 0   ;;  %vm364_vm0 = vcmask (!%p281_p10), 1041408  }
  0x12   : > { %284 = sbr.rel (%p281_p10) target bundleno = 322 (0x142), region = 48  ;;  %v353_v4 = vunpack.c.l.s4 (!%p281_p10), %v833_v3  ;;  %462 = vmatprep.mubr.bf16.mxu1 (!%p281_p10), %v834_v5  ;;  %403 = vmatprep.mubr.bf16.mxu0 (!%p281_p10), %v834_v5  ;;  %v501_v7 = vld [vmem:[#allocation2] sm:$0x1] (!%p281_p10)  ;;  %vm360_vm1 = vcmask (!%p281_p10), 31744   ;;  %s685_s20 = sshll.u32 (!%p281_p10), %s823_s29, 6 }
  0x13   : > { %v356_v6 = vshrl.u32 (!%p281_p10), %v355_v1, 7  ;;  %743 = vset.pattern.permute.xlu0 (!%p281_p10), %v834_v5  ;;  %744 = vset.pattern.permute.xlu1 (!%p281_p10), %v834_v5  ;;  %v481_v9 = vld [vmem:[%s1019_s5] sm:$0xff] (!%p281_p10)  ;;  %s967_s25 = scalar_lea.hbm (!%p281_p10), %s1021_s7, %s685_s20 }
  0x14   : > { %v354_v8 = vunpack.c.0.s8 (!%p281_p10), %v353_v4  ;;  %474 = vperm.xlu0 (!%p281_p10), %743, %v471_v2   ;;  %504 = vperm.xlu1 (!%p281_p10), %744, %v501_v7   ;;  %v349_v18 = vld [vmem:[%s1016_s2] sm:$0xf] (!%p281_p10) }
  0x15   : > { %v350_v19 = vld [vmem:[%s1017_s3] sm:$0xf] (!%p281_p10)  ;;  %v509_v43 = vsub.s32 (!%p281_p10), 0, %v356_v6 }
  0x16   : > { %v357_v10 = vsub.s32 (!%p281_p10), %v354_v8, %v356_v6 }
  0x18   : > { %484 = vperm.xlu0 (!%p281_p10), %743, %v481_v9  }
  0x19   : > { %s327_s18 = scalar_select %p326_p11, %s823_s29, 1 }
  0x1a   : > { %s835_s29 = smov [#allocation3]  }
  0x1b   : > { %s683_s19 = sshll.u32 %s327_s18, 2  ;;  %s322_s18 = sand.u32 1, %s815_s27  }
  0x1c   : > { %s333_s24 = scalar_lea.vmem %s1014_s0, %s683_s19  ;;  %s343_s9 = scalar_lea.vmem %s1015_s1, %s683_s19 }
  0x1d   : > { %v671_v11 = vld.sshfl [vmem:[%s333_s24] sm:$0x33 pattern:$0x76325410]  ;;  %s664_s19 = sshll.u32 %s322_s18, 2  ;;  %s549_s6 = scalar_lea.sflag [#allocation4], %s322_s18 }
  0x1e   : > { %v948_v12 = vld [vmem:[%s343_s9] sm:$0xf]  ;;  %v420_v13 = vcombine.high %v671_v11, %v671_v11  ;;  %v425_v14 = vsel %vm364_vm0, %v671_v11, 0  ;;  %s324_s21 = scalar_lea.vmem [#allocation3], %s664_s19  ;;  %s757_s11 = sshll.u32 %s835_s29, 4  ;;  %s758_s11 = int_to_ptr.vmem [resolvable:$false] %s757_s11 }
  0x1f   : > { %v358_v15 = vrot.slane %v948_v12, %v357_v10  ;;  %v525_v62 = vunpack.c.l.bf16 %v948_v12  ;;  %s565_s22 = sshll.u32 %s324_s21, 4  ;;  %s759_s13 = scalar_lea.vmem %s758_s11, 128  ;;  %s969_s22 = int_to_ptr.vmem [resolvable:$true] %s565_s22 }
  0x20   : > { %672 = vmatprep.subr.msk.bf16.mxu1 %vm364_vm0, %v420_v13  ;;  %s753_s9 = scalar_lea.vmem %s969_s22, 64  ;;  %p760_p1 = scmp.lt.s32.totalorder %s969_s22, %s758_s11 }
  0x21   : > { %v359_v16 = vcombine.high %v358_v15, %v358_v15  ;;  %v366_v17 = vsel %vm364_vm0, %v358_v15, 0  ;;  %431 = vmatpush1.bf16.msra.mxu1 %v425_v14  ;;  %p754_p12 = scmp.ne.s32.totalorder %s969_s22, %s753_s9  ;;  %p761_p2 = scmp.lt.s32.totalorder %s759_s13, %s753_s9 }
  0x23   : > { %669 = vmatprep.subr.msk.bf16.mxu0 %vm364_vm0, %v359_v16  ;;  %p755_p13 = pnand %p754_p12, %p919_p4  ;;  %p762_p3 = por %p761_p2, %p760_p1 }
  0x24   : > { %372 = vmatpush1.bf16.msra.mxu0 %v366_v17  ;;  %673 = vmatmul.mubr.msk.bf16.vlgmr.msra.gmra.mrb[0].mxu1 %vm360_vm1, %v349_v18 }
  0x25   : > { %p756_p0 = pneg %p755_p13 }
  0x27   : > { %670 = vmatmul.mubr.msk.bf16.vlgmr.msra.gmra.mrb[0].mxu0 %vm360_vm1, %v350_v19  ;;  %p763_p5 = pnand %p762_p3, %p756_p0 }
  0x93   : > { %v475_v21 = vpop.permute.xlu0 %474  ;;  %v505_v45 = vpop.permute.xlu1 %504 }
  0x94   : > { %v510_v49 = vrot.slane %v505_v45, %v509_v43 }
  0x97   : > { %v485_v34 = vpop.permute.xlu0 %484 }
  0xf7   : > { %v464_v20 = vpop.f32.mrb[0].mxu1 }
  0xf8   : > { %v466_v22 = vpop.f32.mrb[1].mxu1 }
  0xf9   : > { %v468_v24 = vpop.f32.mrb[2].mxu1 }
  0xfa   : > { %v405_v23 = vpop.f32.mrb[0].mxu0  ;;  %v469_v27 = vpop.f32.mrb[3].mxu1 }
  0xfb   : > { %v465_v25 = vadd.f32 %v464_v20, %v405_v23  ;;  %v407_v26 = vpop.f32.mrb[1].mxu0 }
  0xfc   : > { %v467_v28 = vadd.f32 %v466_v22, %v407_v26  ;;  %v409_v29 = vpop.f32.mrb[2].mxu0 }
  0xfd   : > { %v477_v30 = vadd.f32 %v475_v21, %v465_v25  ;;  %v410_v31 = vpop.f32.mrb[3].mxu0 }
  0xfe   : > { %v478_v32 = vadd.f32 %v475_v21, %v467_v28 }
  0xff   : > { %v479_v33 = vmax.f32 %v477_v30, 0.0 }
 0x100   : > { %v480_v35 = vmax.f32 %v478_v32, 0.0 }
 0x101   : > { %v487_v36 = vmul.f32 %v485_v34, %v479_v33 }
 0x102   : > { %v488_v37 = vmul.f32 %v485_v34, %v480_v35 }
 0x103   : > { %v489_v38 = vrot.slane %v487_v36, 4 }
 0x104   : > { %v495_v39 = vrot.slane %v488_v37, 4 }
 0x105   : > { %v490_v40 = vadd.f32 %v489_v38, %v487_v36 }
 0x106   : > { %v496_v41 = vadd.f32 %v495_v39, %v488_v37 }
 0x107   : > { %v491_v42 = vrot.slane %v490_v40, 2 }
 0x108   : > { %v497_v44 = vrot.slane %v496_v41, 2 }
 0x109   : > { %v492_v46 = vadd.f32 %v491_v42, %v490_v40 }
 0x10a   : > { %v498_v47 = vadd.f32 %v497_v44, %v496_v41 }
 0x10b   : > { %v493_v48 = vrot.slane %v492_v46, 1 }
 0x10c   : > { %v499_v50 = vrot.slane %v498_v47, 1 }
 0x10d   : > { %v494_v51 = vadd.f32 %v493_v48, %v492_v46 }
 0x10e   : > { %v500_v52 = vadd.f32 %v499_v50, %v498_v47 }
 0x10f   : > { %v511_v53 = vadd.f32 %v510_v49, %v494_v51 }
 0x110   : > { %v512_v54 = vadd.f32 %v510_v49, %v500_v52 }
 0x111   : > { %v674_v55 = vmul.f32 -1.442695, %v511_v53 }
 0x112   : > { %v675_v56 = vmul.f32 -1.442695, %v512_v54 }
 0x113   : > { %745 = vpow2.f32 %v674_v55 }
 0x114   : > { %747 = vpow2.f32 %v675_v56 }
 0x11d   : > { %v746_v57 = vpop.eup %745 }
 0x11e   : > { %v748_v58 = vpop.eup %747  ;;  %v519_v59 = vadd.f32 1.0, %v746_v57 }
 0x11f   : > { %v520_v60 = vadd.f32 1.0, %v748_v58 }
 0x120   : > { %749 = vrcp.f32 %v519_v59 }
 0x121   : > { %751 = vrcp.f32 %v520_v60 }
 0x12a   : > { %v750_v61 = vpop.eup %749 }
 0x12b   : > { %v752_v63 = vpop.eup %751 }
 0x12c   : > { %v528_v0 = vcombine.low %v750_v61, %v752_v63 }
 0x12e   : > { %v530_v1 = vmul.f32 %v528_v0, %v525_v62 }
 0x130   : > { %v532_v2 = vcombine.high %v530_v1, %v530_v1 }
 0x132   : > { %v676_v3 = vpack.c.bf16 %v532_v2, %v530_v1 }
 0x134   : > { %677 = vst.sshfl [vmem:[%s324_s21] sm:$0x33 pattern:$0x76325410] %v676_v3 }
 0x135   : > { %766 = shalt.err (!%p763_p5)
}
 0x136   : > { %s767_s16 = scalar_lea.hbm %s967_s25, 64  ;;  %s771_s19 = scalar_lea.hbm %s1021_s7, 128 }
 0x137   : > { %p768_p6 = scmp.ne.s32.totalorder %s967_s25, %s767_s16  ;;  %p772_p10 = scmp.lt.u32.totalorder %s967_s25, %s1021_s7 }
 0x138   : > { %p773_p11 = scmp.lt.u32.totalorder %s771_s19, %s767_s16  ;;  %p775_p13 = scmp.lt.u32.totalorder %s767_s16, %s967_s25 }
 0x139   : > { %p769_p7 = pnand %p768_p6, %p919_p4 }
 0x13a   : > { %p774_p12 = por %p773_p11, %p772_p10 }
 0x13b   : > { %p770_p9 = pneg %p769_p7 }
 0x13c   : > { %p776_p0 = por %p775_p13, %p774_p12 }
 0x13e   : > { %p777_p1 = pnand %p776_p0, %p770_p9 }
 0x140   : > { %780 = shalt.err (!%p777_p1)
}
 0x141   : > { %686 = dma.vmem_to_hbm [thread:$0]  (%p919_p4), %s969_s22, 64, %s967_s25, %s549_s6  }
 0x142 PF: > { %p692_p2 = scmp.ge.s32.totalorder %s831_s8, 2  ;;  %s577_s23 = sand.u32 1, %s811_s26  }
 0x143   : > { %s578_s24 = scalar_lea.sflag [#allocation4], %s577_s23 }
 0x144   : > { %p689_p3 = pnand %p692_p2, %p926_p8 }
 0x146   : > { %806 = dma.done.wait (!%p689_p3), %s578_s24, 64  }
 0x147   : > { %808 = vsyncadd (!%p689_p3), %s578_s24, 4294967232  ;;  %s22_s8 = sadd.s32 1, %s831_s8   ;;  %s1024_s26 = smov %s815_s27 }
 0x148   : > { %p19_p5 = scmp.ge.s32.totalorder %s22_s8, 4   ;;  %s1025_s27 = smov %s819_s28 }
 0x149   : > { %s1026_s28 = smov %s932_s15  ;;  %s1027_s29 = smov %s827_s30 }
 0x14a   : > { %s1028_s30 = smov %s1030_s10  ;;  %21 = sbr.rel (!%p19_p5) target bundleno = 7 (0x7), region = 86 }
 0x151   :  { %583 = vsyncpa [#allocation4], 1 }
 0x152   :  { %585 = vsyncpa [#allocation4 + $0x1], 1 }

</bundles_post_ra>
